<compile_context>
chip_gen: v6e
topology: v6e:2x2x1
jax: 0.10.0
libtpu: 0.0.40
codegen_flags: <defaults>
</compile_context>

<pallas_src>
import jax
import jax.numpy as jnp
from jax.experimental import pallas as pl
from jax.experimental.pallas import tpu as pltpu


def _se_kernel(x_ref, w1t_ref, b1_ref, w2t_ref, b2_ref, o_ref):
    # x block: (NB, C, HW) in the input dtype.
    x = x_ref[...]

    # AdaptiveAvgPool2d(1): global mean over the flattened spatial positions
    # (lane reduction on the XLU; data is already VMEM-resident).
    pooled = jnp.mean(x, axis=-1).astype(jnp.float32)                # (NB, C)

    # conv1 (1x1 conv == dense) + bias + ReLU  -> MXU matmul, f32 accumulate.
    h = jnp.dot(pooled, w1t_ref[...],
                preferred_element_type=jnp.float32,
                precision=jax.lax.Precision.HIGHEST)                 # (NB, S)
    h = jnp.maximum(h + b1_ref[...], 0.0)

    # conv2 (1x1 conv == dense) + bias + ReLU (ConvNormActivation's act).
    s = jnp.dot(h, w2t_ref[...],
                preferred_element_type=jnp.float32,
                precision=jax.lax.Precision.HIGHEST)                 # (NB, C)
    s = jnp.maximum(s + b2_ref[...], 0.0)

    # scale_activation (Sigmoid) on the EUP, then broadcast-multiply the input.
    # Cast the per-channel scale back to the input dtype so the big elementwise
    # multiply (and the store) stay in the input precision.
    scale = jax.nn.sigmoid(s).astype(x.dtype)                        # (NB, C)
    o_ref[...] = x * scale[:, :, None]                               # (NB, C, HW)


def _choose_batch_block(n, c, hw, itemsize, budget_bytes=8 << 20):
    """Largest divisor NB of n whose double-buffered in+out slabs fit budget."""
    per_sample = c * hw * itemsize
    max_nb = max(1, budget_bytes // (4 * per_sample))   # 2 in-bufs + 2 out-bufs
    nb = int(min(n, max_nb))
    while n % nb != 0:
        nb -= 1
    return nb


def squeeze_excitation(x_nchw, w1, b1, w2, b2):
    """x_nchw: (N, C, H, W); w1: (S, C); b1: (S,); w2: (C, S); b2: (C,)."""
    N, C, H, W = x_nchw.shape
    S = w1.shape[0]
    HW = H * W
    dtype = x_nchw.dtype
    itemsize = jnp.dtype(dtype).itemsize

    # TODO(synk): when H*W is not a multiple of 128, stores along the lane axis
    # are masked (vst.msk); padding HW (or folding NB*C onto sublanes with an
    # 8-aligned row block) would make them fully lane-dense.
    x = x_nchw.reshape(N, C, HW)
    w1t = w1.T                        # (C, S): pooled @ w1t
    w2t = w2.T                        # (S, C): h @ w2t
    b1r = b1.reshape(1, S)
    b2r = b2.reshape(1, C)

    NB = _choose_batch_block(N, C, HW, itemsize)
    param_bytes = 2 * (w1.size + w2.size + b1.size + b2.size) * 4
    footprint = 4 * NB * C * HW * itemsize + param_bytes

    params = {"dimension_semantics": ("parallel",)}
    if footprint > (12 << 20):
        # Raise the scoped VMEM limit (v5e's default is only 16 MiB) when a
        # single sample's feature-map slab is large.  Cap well under v7x's
        # 64 MiB physical VMEM.
        # TODO(synk): for slabs beyond this cap, split into a two-pass kernel
        # (pass 1: pool->FC->scale per (N, C); pass 2: scale*x tiled over HW).
        params["vmem_limit_bytes"] = int(min(footprint + (4 << 20), 48 << 20))
    compiler_params = pltpu.CompilerParams(**params)

    out = pl.pallas_call(
        _se_kernel,
        out_shape=jax.ShapeDtypeStruct((N, C, HW), dtype),
        grid_spec=pltpu.PrefetchScalarGridSpec(
            num_scalar_prefetch=0,
            grid=(N // NB,),
            in_specs=[
                pl.BlockSpec((NB, C, HW), lambda n: (n, 0, 0)),
                pl.BlockSpec((C, S), lambda n: (0, 0)),   # VMEM-resident weights
                pl.BlockSpec((1, S), lambda n: (0, 0)),
                pl.BlockSpec((S, C), lambda n: (0, 0)),
                pl.BlockSpec((1, C), lambda n: (0, 0)),
            ],
            out_specs=pl.BlockSpec((NB, C, HW), lambda n: (n, 0, 0)),
        ),
        compiler_params=compiler_params,
    )(x, w1t, b1r, w2t, b2r)

    return out.reshape(N, C, H, W)


def _reference(x, w1, b1, w2, b2):
    pooled = jnp.mean(x, axis=(2, 3))                               # (N, C)
    h = jnp.maximum(
        jnp.dot(pooled, w1.T, precision=jax.lax.Precision.HIGHEST) + b1, 0.0)
    s = jnp.maximum(
        jnp.dot(h, w2.T, precision=jax.lax.Precision.HIGHEST) + b2, 0.0)
    scale = jax.nn.sigmoid(s)[:, :, None, None]                     # (N, C, 1, 1)
    return scale * x


if __name__ == "__main__":
    # Small shapes consistent with the module: N=2, C=4, H=W=16, squeeze=2.
    N, C, H, W = 2, 4, 16, 16
    S = 2

    key = jax.random.PRNGKey(0)
    kx, k1, k2, k3, k4 = jax.random.split(key, 5)

    x = jax.random.normal(kx, (N, C, H, W), dtype=jnp.float32)
    # Deterministic synthetic parameters (1x1 conv == dense).
    w1 = jax.random.normal(k1, (S, C), dtype=jnp.float32) * 0.5   # conv1 weight
    b1 = jax.random.normal(k2, (S,), dtype=jnp.float32) * 0.1     # conv1 bias
    w2 = jax.random.normal(k3, (C, S), dtype=jnp.float32) * 0.5   # conv2 weight
    b2 = jax.random.normal(k4, (C,), dtype=jnp.float32) * 0.1     # conv2 bias

    out = squeeze_excitation(x, w1, b1, w2, b2)
    out = jax.block_until_ready(out)

    ref = _reference(x, w1, b1, w2, b2)
    assert out.shape == (N, C, H, W)
    assert jnp.allclose(out, ref, atol=1e-5, rtol=1e-5)

    print("KERNEL_OK")
</pallas_src>

<mosaic_0001>
module attributes {stable_mosaic.version = 11 : i64} {
  func.func @_se_kernel(%arg0: i32, %arg1: memref<2x4x256xf32, #tpu.memory_space<vmem>>, %arg2: memref<4x2xf32, #tpu.memory_space<vmem>>, %arg3: memref<1x2xf32, #tpu.memory_space<vmem>>, %arg4: memref<2x4xf32, #tpu.memory_space<vmem>>, %arg5: memref<1x4xf32, #tpu.memory_space<vmem>>, %arg6: memref<2x4x256xf32, #tpu.memory_space<vmem>>) attributes {dimension_semantics = [#tpu.dimension_semantics<parallel>], iteration_bounds = array<i64: 1>, scalar_prefetch = 0 : i64, scratch_operands = 0 : i64, tpu.core_type = #tpu.core_type<tc>, window_params = [{transform_indices = @transform_0, window_bounds = array<i64: 2, 4, 256>}, {pipeline_mode = #tpu.pipeline_mode<synchronous>, transform_indices = @transform_1, window_bounds = array<i64: 4, 2>}, {pipeline_mode = #tpu.pipeline_mode<synchronous>, transform_indices = @transform_2, window_bounds = array<i64: 1, 2>}, {pipeline_mode = #tpu.pipeline_mode<synchronous>, transform_indices = @transform_3, window_bounds = array<i64: 2, 4>}, {pipeline_mode = #tpu.pipeline_mode<synchronous>, transform_indices = @transform_4, window_bounds = array<i64: 1, 4>}, {transform_indices = @transform_5, window_bounds = array<i64: 2, 4, 256>}]} {
    %c0 = arith.constant 0 : index
    %c0_0 = arith.constant 0 : index
    %c0_1 = arith.constant 0 : index
    %0 = vector.load %arg1[%c0, %c0_0, %c0_1] : memref<2x4x256xf32, #tpu.memory_space<vmem>>, vector<2x4x256xf32>
    %cst = arith.constant dense<0.000000e+00> : vector<2x4xf32>
    %1 = vector.multi_reduction <add>, %0, %cst [2] : vector<2x4x256xf32> to vector<2x4xf32>
    %cst_2 = arith.constant 2.560000e+02 : f32
    %2 = vector.broadcast %cst_2 : f32 to vector<2x4xf32>
    %3 = arith.divf %1, %2 : vector<2x4xf32>
    %c0_3 = arith.constant 0 : index
    %c0_4 = arith.constant 0 : index
    %4 = vector.load %arg2[%c0_3, %c0_4] : memref<4x2xf32, #tpu.memory_space<vmem>>, vector<4x2xf32>
    %cst_5 = arith.constant dense<0.000000e+00> : vector<2x2xf32>
    %5 = tpu.matmul %3, %4, %cst_5 {dimension_numbers = #tpu.dot_dimension_numbers<[1], [0], [0], [1], [0, 0, 1, 1], [], []>, precision = #tpu.contract_precision<fp32>} : vector<2x4xf32>, vector<4x2xf32>, vector<2x2xf32> -> vector<2x2xf32>
    %c0_6 = arith.constant 0 : index
    %c0_7 = arith.constant 0 : index
    %6 = vector.load %arg3[%c0_6, %c0_7] : memref<1x2xf32, #tpu.memory_space<vmem>>, vector<1x2xf32>
    %7 = vector.broadcast %6 : vector<1x2xf32> to vector<2x2xf32>
    %8 = arith.addf %5, %7 : vector<2x2xf32>
    %cst_8 = arith.constant 0.000000e+00 : f32
    %9 = vector.broadcast %cst_8 : f32 to vector<2x2xf32>
    %10 = arith.maximumf %8, %9 : vector<2x2xf32>
    %c0_9 = arith.constant 0 : index
    %c0_10 = arith.constant 0 : index
    %11 = vector.load %arg4[%c0_9, %c0_10] : memref<2x4xf32, #tpu.memory_space<vmem>>, vector<2x4xf32>
    %cst_11 = arith.constant dense<0.000000e+00> : vector<2x4xf32>
    %12 = tpu.matmul %10, %11, %cst_11 {dimension_numbers = #tpu.dot_dimension_numbers<[1], [0], [0], [1], [0, 0, 1, 1], [], []>, precision = #tpu.contract_precision<fp32>} : vector<2x2xf32>, vector<2x4xf32>, vector<2x4xf32> -> vector<2x4xf32>
    %c0_12 = arith.constant 0 : index
    %c0_13 = arith.constant 0 : index
    %13 = vector.load %arg5[%c0_12, %c0_13] : memref<1x4xf32, #tpu.memory_space<vmem>>, vector<1x4xf32>
    %14 = vector.broadcast %13 : vector<1x4xf32> to vector<2x4xf32>
    %15 = arith.addf %12, %14 : vector<2x4xf32>
    %cst_14 = arith.constant 0.000000e+00 : f32
    %16 = vector.broadcast %cst_14 : f32 to vector<2x4xf32>
    %17 = arith.maximumf %15, %16 : vector<2x4xf32>
    %18 = arith.negf %17 : vector<2x4xf32>
    %19 = math.exp %18 : vector<2x4xf32>
    %cst_15 = arith.constant 1.000000e+00 : f32
    %20 = vector.broadcast %cst_15 : f32 to vector<2x4xf32>
    %21 = arith.addf %20, %19 : vector<2x4xf32>
    %22 = arith.divf %20, %21 : vector<2x4xf32>
    %23 = vector.shape_cast %22 : vector<2x4xf32> to vector<2x4x1xf32>
    %24 = vector.broadcast %23 : vector<2x4x1xf32> to vector<2x4x256xf32>
    %25 = arith.mulf %0, %24 : vector<2x4x256xf32>
    %c0_16 = arith.constant 0 : index
    %c0_17 = arith.constant 0 : index
    %c0_18 = arith.constant 0 : index
    %26 = vector.load %arg6[%c0_16, %c0_17, %c0_18] : memref<2x4x256xf32, #tpu.memory_space<vmem>>, vector<2x4x256xf32>
    tpu.vector_store %arg6[%c0_16, %c0_17, %c0_18], %25 {strides = array<i32>} : memref<2x4x256xf32, #tpu.memory_space<vmem>>, vector<2x4x256xf32>,
    return
  }
  func.func @transform_0(%arg0: i32) -> (i32, i32, i32) {
    %c0_i32 = arith.constant 0 : i32
    %c0_i32_0 = arith.constant 0 : i32
    %c0_i32_1 = arith.constant 0 : i32
    return %arg0, %c0_i32, %c0_i32_0 : i32, i32, i32
  }
  func.func @transform_1(%arg0: i32) -> (i32, i32) {
    %c0_i32 = arith.constant 0 : i32
    %c0_i32_0 = arith.constant 0 : i32
    %c0_i32_1 = arith.constant 0 : i32
    return %c0_i32, %c0_i32_0 : i32, i32
  }
  func.func @transform_2(%arg0: i32) -> (i32, i32) {
    %c0_i32 = arith.constant 0 : i32
    %c0_i32_0 = arith.constant 0 : i32
    %c0_i32_1 = arith.constant 0 : i32
    return %c0_i32, %c0_i32_0 : i32, i32
  }
  func.func @transform_3(%arg0: i32) -> (i32, i32) {
    %c0_i32 = arith.constant 0 : i32
    %c0_i32_0 = arith.constant 0 : i32
    %c0_i32_1 = arith.constant 0 : i32
    return %c0_i32, %c0_i32_0 : i32, i32
  }
  func.func @transform_4(%arg0: i32) -> (i32, i32) {
    %c0_i32 = arith.constant 0 : i32
    %c0_i32_0 = arith.constant 0 : i32
    %c0_i32_1 = arith.constant 0 : i32
    return %c0_i32, %c0_i32_0 : i32, i32
  }
  func.func @transform_5(%arg0: i32) -> (i32, i32, i32) {
    %c0_i32 = arith.constant 0 : i32
    %c0_i32_0 = arith.constant 0 : i32
    %c0_i32_1 = arith.constant 0 : i32
    return %arg0, %c0_i32, %c0_i32_0 : i32, i32, i32
  }
}

</mosaic_0001>

<bundles_post_ra>
// kernel: tpu_custom_call.1
= control target key start
LH: loop header
LB: loop body
LE: loop exit
PB: predicated region body
PF: predicated region fallthrough
CT: control target
= control target key end

     0   :  { %10 = vsyncpa [#allocation3], 0  ;;  %s1313_s0 = inlined_call_operand.hbm [shape: f32[2,4,256], index: 0, kind: input, shape index: {}]   ;;  %s1314_s1 = inlined_call_operand.vmem [shape: f32[4,2], index: 1, kind: input, shape index: {}]   ;;  %s1315_s2 = inlined_call_operand.vmem [shape: f32[1,2], index: 2, kind: input, shape index: {}]   ;;  %s1316_s3 = inlined_call_operand.vmem [shape: f32[2,4], index: 3, kind: input, shape index: {}]   ;;  %s1317_s4 = inlined_call_operand.vmem [shape: f32[1,4], index: 4, kind: input, shape index: {}]   ;;  %s1318_s5 = inlined_call_operand.hbm [shape: f32[2,4,256], index: 5, kind: output, shape index: {}]  }
   0x1   :  { %11 = vsyncpa [#allocation4], 0  ;;  %s1198_s18 = smov [#allocation2]  }
   0x2   :  { %s17_s19 = sshll.u32 %s1198_s18, 4  ;;  %s18_s19 = int_to_ptr.vmem [resolvable:$true] %s17_s19 }
   0x3   :  { %s1162_s20 = scalar_lea.vmem %s18_s19, 256  ;;  %p1167_p1 = scmp.lt.s32.totalorder %s18_s19, %s18_s19 }
   0x4   :  { %p1163_p0 = scmp.ne.s32.totalorder %s18_s19, %s1162_s20  ;;  %p1168_p2 = scmp.lt.s32.totalorder %s1162_s20, %s1162_s20 }
   0x6   :  { %p1169_p3 = por %p1168_p2, %p1167_p1 }
   0x8   :  { %p1170_p4 = pnand %p1169_p3, %p1163_p0 }
   0xa   :  { %1173 = shalt.err (!%p1170_p4)
}
   0xb   :  { %s1199_s21 = smov 128   ;;  %s1200_s22 = smov 8  }
   0xc   :  { %23 = dma.hbm_to_vmem [thread:$0]  %s1313_s0, 256, %s18_s19, [#allocation3], %s1199_s21, %s1199_s21, %s1200_s22  }
   0xd   :  { %1194 = dma.done.wait [#allocation3], 256  }
   0xe   :  { %1195 = vsyncadd [#allocation3], 4294967040  ;;  %vm43_vm0 = vcmask 1043456   ;;  %v1241_v0 = vld [vmem:[#allocation2] sm:$0xff]  ;;  %v1243_v1 = vld [vmem:[#allocation2 + $0x8] sm:$0xff]  ;;  %v1201_v17 = vmov 0.0   ;;  %v67_v18 = vlaneseq }
   0xf   :  { %v39_v2 = vcombine.high %v1241_v0, %v1241_v0  ;;  %v44_v3 = vsel %vm43_vm0, %v1241_v0, 0.0  ;;  %v40_v4 = vcombine.high %v1243_v1, %v1243_v1  ;;  %v49_v6 = vsel %vm43_vm0, %v1243_v1, 0.0  ;;  %v57_v10 = vld [vmem:[%s1314_s1] sm:$0xf]  ;;  %1086 = vmatprep.subr.mxu1 %v1201_v17  ;;  %1081 = vmatprep.subr.mxu0 %v1201_v17 }
  0x10   :  { %v83_v11 = vsel %vm43_vm0, %v57_v10, 0  ;;  %vm1202_vm1 = vmmov 0   ;;  %v68_v19 = vand.u32 127, %v67_v18  ;;  %v1262_v20 = vshrl.u32 %v67_v18, 7  ;;  %v532_v35 = vld [vmem:[%s1316_s3] sm:$0x3] }
  0x11   :  { %v45_v5 = vsel %vm43_vm0, %v39_v2, 0.0  ;;  %v50_v7 = vsel %vm43_vm0, %v40_v4, 0.0  ;;  %v116_v12 = vand.u32 4294901760, %v83_v11  ;;  %1088 = vmatprep.mubr.msk.f32.mxu1 %vm1202_vm1, %v1201_v17  ;;  %1083 = vmatprep.mubr.msk.f32.mxu0 %vm1202_vm1, %v1201_v17  ;;  %vm77_vm2 = vcmask 1041409   ;;  %v1054_v46 = vld [vmem:[%s1315_s2] ss:$0 sm:$0xff] }
  0x12   :  { %v46_v8 = vadd.f32 %v45_v5, %v44_v3  ;;  %v51_v9 = vadd.f32 %v50_v7, %v49_v6  ;;  %v71_v22 = vsub.s32 %v68_v19, %v1262_v20  ;;  %vm79_vm3 = vcmask 31744   ;;  %v1055_v10 = vld [vmem:[%s1317_s4] ss:$0 sm:$0xff]  ;;  %s1204_s4 = smov [#allocation5]  }
  0x13   :  { %v193_v13 = vsub.f32 %v83_v11, %v116_v12  ;;  %1082 = vmatpush3.msra.mxu0 %v116_v12  ;;  %vm544_vm4 = vcmask 1041408   ;;  %vm540_vm5 = vcmask 15360   ;;  %s1042_s29 = sshll.u32 %s1204_s4, 4  ;;  %s1043_s29 = int_to_ptr.vmem [resolvable:$true] %s1042_s29 }
  0x14   :  { %47 = vadd.xlane.f32.xlu0 %v46_v8  ;;  %1091 = vmatprep.subr.mxu0 %v1201_v17  ;;  %v546_v36 = vsel %vm544_vm4, %v532_v35, 0  ;;  %v1203_v35 = vmov 839922192   ;;  %s1174_s30 = scalar_lea.vmem %s1043_s29, 256  ;;  %p1179_p6 = scmp.lt.s32.totalorder %s1043_s29, %s1043_s29 }
  0x15   :  { %v194_v14 = vand.u32 4294901760, %v193_v13  ;;  %v579_v37 = vand.u32 4294901760, %v546_v36  ;;  %p1175_p5 = scmp.ne.s32.totalorder %s1043_s29, %s1174_s30  ;;  %p1180_p7 = scmp.lt.s32.totalorder %s1174_s30, %s1174_s30 }
  0x17   :  { %v195_v15 = vsub.f32 %v193_v13, %v194_v14  ;;  %v656_v38 = vsub.f32 %v546_v36, %v579_v37  ;;  %v1018_v36 = vunpack.c.l.s4 %v1203_v35  ;;  %p1181_p8 = por %p1180_p7, %p1179_p6 }
  0x18   :  { %52 = vadd.xlane.f32.xlu0 %v51_v9 }
  0x19   :  { %v196_v16 = vand.u32 4294901760, %v195_v15  ;;  %v657_v39 = vand.u32 4294901760, %v656_v38  ;;  %p1182_p9 = pnand %p1181_p8, %p1175_p5 }
  0x1b   :  { %1087 = vmatpush3.msra.mxu1 %v196_v16  ;;  %v658_v40 = vsub.f32 %v656_v38, %v657_v39 }
  0x1c   :  { %1096 = vmatprep.subr.mxu1 %v1201_v17 }
  0x1d   :  { %v659_v41 = vand.u32 4294901760, %v658_v40 }
  0x9d   :  { %v48_v21 = vpop.xlane.xlu0 %47 }
  0x9e   :  { %v55_v23 = vmul.f32 0.00390625, %v48_v21 }
  0xa0   :  { %v72_v26 = vrot.slane %v55_v23, %v71_v22 }
  0xa1   :  { %v53_v24 = vpop.xlane.xlu0 %52 }
  0xa2   :  { %v56_v25 = vmul.f32 0.00390625, %v53_v24 }
  0xa4   :  { %v76_v27 = vrot.slane %v56_v25, %v71_v22 }
  0xa6   :  { %v78_v28 = vsel %vm77_vm2, %v76_v27, %v72_v26 }
  0xa7   :  { %v80_v29 = vsel %vm79_vm3, %v78_v28, 0 }
  0xa8   :  { %v151_v30 = vand.u32 4294901760, %v80_v29 }
  0xaa   :  { %1089 = vmatmul.mubr.f32.vlgmr.msra.gmra.mxu1 %v151_v30  ;;  %v152_v31 = vsub.f32 %v80_v29, %v151_v30 }
  0xab   :  { %1097 = vmatpush3.msra.mxu1 %v116_v12  ;;  %1098 = vmatprep.mubr.msk.f32.mxu1 %vm1202_vm1, %v1201_v17 }
  0xac   :  { %v153_v32 = vand.u32 4294901760, %v152_v31  ;;  %1106 = vmatprep.subr.mxu1 %v1201_v17 }
  0xae   :  { %1099 = vmatmul.mubr.f32.vlgmr.msra.gmra.mxu1 %v153_v32  ;;  %v154_v33 = vsub.f32 %v152_v31, %v153_v32 }
  0xaf   :  { %1107 = vmatpush3.msra.mxu1 %v116_v12  ;;  %1108 = vmatprep.mubr.msk.f32.mxu1 %vm1202_vm1, %v1201_v17 }
  0xb0   :  { %v155_v34 = vand.u32 4294901760, %v154_v33  ;;  %1116 = vmatprep.subr.mxu1 %v1201_v17  ;;  %v1010_v33 = vsub.s32 1, %v1262_v20 }
  0xb2   :  { %1084 = vmatmul.mubr.f32.vlgmr.msra.gmra.mxu0 %v155_v34  ;;  %1109 = vmatmul.mubr.f32.vlgmr.msra.gmra.mxu1 %v151_v30 }
  0xb3   :  { %1092 = vmatpush3.msra.mxu0 %v193_v13  ;;  %1093 = vmatprep.mubr.msk.f32.mxu0 %vm1202_vm1, %v1201_v17 }
  0xb4   :  { %1101 = vmatprep.subr.mxu0 %v1201_v17  ;;  %1118 = vmatprep.mubr.msk.f32.mxu1 %vm1202_vm1, %v1201_v17 }
  0xb5   :  { %1117 = vmatpush3.msra.mxu1 %v659_v41 }
  0xb6   :  { %1094 = vmatmul.mubr.f32.vlgmr.msra.gmra.mxu0 %v152_v31  ;;  %1126 = vmatprep.subr.mxu1 %v1201_v17 }
  0xb7   :  { %1102 = vmatpush3.msra.mxu0 %v194_v14  ;;  %1103 = vmatprep.mubr.msk.f32.mxu0 %vm1202_vm1, %v1201_v17 }
  0xb8   :  { %1111 = vmatprep.subr.mxu0 %v1201_v17 }
  0xba   :  { %1104 = vmatmul.mubr.f32.vlgmr.msra.gmra.mxu0 %v151_v30  ;;  %v1003_v30 = vsub.s32 0, %v1262_v20 }
  0xbb   :  { %1113 = vmatprep.mubr.msk.f32.mxu0 %vm1202_vm1, %v1201_v17  ;;  %1112 = vmatpush3.msra.mxu0 %v579_v37 }
  0xbc   :  { %1121 = vmatprep.subr.mxu0 %v1201_v17 }
 0x16a   :  { %v233_v42 = vpop.f32.mrf.mxu1 }
 0x16c   :  { %v1090_v43 = vpop.f32.mrf.mxu1 }
 0x16e   :  { %v381_v44 = vpop.f32.mrf.mxu1 }
 0x170   :  { %v1100_v45 = vpop.f32.mrf.mxu1 }
 0x172   :  { %v157_v47 = vpop.f32.mrf.mxu0  ;;  %v527_v48 = vpop.f32.mrf.mxu1 }
 0x173   :  { %v158_v49 = vadd.f32 %v1054_v46, %v157_v47 }
 0x174   :  { %v1085_v50 = vpop.f32.mrf.mxu0  ;;  %v1110_v51 = vpop.f32.mrf.mxu1 }
 0x175   :  { %v234_v52 = vadd.f32 %v233_v42, %v158_v49 }
 0x176   :  { %v307_v53 = vpop.f32.mrf.mxu0 }
 0x177   :  { %v308_v54 = vadd.f32 %v307_v53, %v234_v52 }
 0x178   :  { %v1095_v55 = vpop.f32.mrf.mxu0 }
 0x179   :  { %v382_v56 = vadd.f32 %v381_v44, %v308_v54 }
 0x17a   :  { %v455_v57 = vpop.f32.mrf.mxu0 }
 0x17b   :  { %v456_v58 = vadd.f32 %v455_v57, %v382_v56 }
 0x17c   :  { %v1105_v59 = vpop.f32.mrf.mxu0 }
 0x17d   :  { %v528_v60 = vadd.f32 %v527_v48, %v456_v58 }
 0x17f   :  { %v531_v61 = vmax.f32 %v528_v60, 0.0 }
 0x181   :  { %v542_v62 = vsel %vm540_vm5, %v531_v61, 0 }
 0x182   :  { %v614_v63 = vand.u32 4294901760, %v542_v62 }
 0x184   :  { %v615_v2 = vsub.f32 %v542_v62, %v614_v63  ;;  %1119 = vmatmul.mubr.f32.vlgmr.msra.gmra.mxu1 %v614_v63 }
 0x185   :  { %1127 = vmatpush3.msra.mxu1 %v579_v37  ;;  %1128 = vmatprep.mubr.msk.f32.mxu1 %vm1202_vm1, %v1201_v17 }
 0x186   :  { %v616_v3 = vand.u32 4294901760, %v615_v2  ;;  %1136 = vmatprep.subr.mxu1 %v1201_v17 }
 0x188   :  { %1129 = vmatmul.mubr.f32.vlgmr.msra.gmra.mxu1 %v616_v3  ;;  %v617_v4 = vsub.f32 %v615_v2, %v616_v3 }
 0x189   :  { %1137 = vmatpush3.msra.mxu1 %v579_v37  ;;  %1138 = vmatprep.mubr.msk.f32.mxu1 %vm1202_vm1, %v1201_v17  ;;  %v1019_v37 = vunpack.c.0.s8 %v1018_v36 }
 0x18a   :  { %v618_v5 = vand.u32 4294901760, %v617_v4 }
 0x18c   :  { %1114 = vmatmul.mubr.f32.vlgmr.msra.gmra.mxu0 %v618_v5  ;;  %1139 = vmatmul.mubr.f32.vlgmr.msra.gmra.mxu1 %v614_v63 }
 0x18d   :  { %1122 = vmatpush3.msra.mxu0 %v656_v38  ;;  %1123 = vmatprep.mubr.msk.f32.mxu0 %vm1202_vm1, %v1201_v17  ;;  %v1022_v38 = vsub.s32 %v1019_v37, %v1262_v20 }
 0x18e   :  { %1131 = vmatprep.subr.mxu0 %v1201_v17 }
 0x190   :  { %1124 = vmatmul.mubr.f32.vlgmr.msra.gmra.mxu0 %v615_v2 }
 0x191   :  { %1132 = vmatpush3.msra.mxu0 %v657_v39  ;;  %1133 = vmatprep.mubr.msk.f32.mxu0 %vm1202_vm1, %v1201_v17 }
 0x194   :  { %1134 = vmatmul.mubr.f32.vlgmr.msra.gmra.mxu0 %v614_v63 }
 0x244   :  { %v696_v6 = vpop.f32.mrf.mxu1 }
 0x246   :  { %v1120_v7 = vpop.f32.mrf.mxu1 }
 0x248   :  { %v844_v8 = vpop.f32.mrf.mxu1 }
 0x24a   :  { %v1130_v9 = vpop.f32.mrf.mxu1 }
 0x24c   :  { %v620_v11 = vpop.f32.mrf.mxu0  ;;  %v990_v12 = vpop.f32.mrf.mxu1 }
 0x24d   :  { %v621_v13 = vadd.f32 %v1055_v10, %v620_v11 }
 0x24e   :  { %v1115_v14 = vpop.f32.mrf.mxu0  ;;  %v1140_v15 = vpop.f32.mrf.mxu1 }
 0x24f   :  { %v697_v16 = vadd.f32 %v696_v6, %v621_v13 }
 0x250   :  { %v770_v18 = vpop.f32.mrf.mxu0 }
 0x251   :  { %v771_v19 = vadd.f32 %v770_v18, %v697_v16 }
 0x252   :  { %v1125_v21 = vpop.f32.mrf.mxu0 }
 0x253   :  { %v845_v22 = vadd.f32 %v844_v8, %v771_v19 }
 0x254   :  { %v918_v17 = vpop.f32.mrf.mxu0 }
 0x255   :  { %v919_v23 = vadd.f32 %v918_v17, %v845_v22 }
 0x256   :  { %v1135_v24 = vpop.f32.mrf.mxu0 }
 0x257   :  { %v991_v25 = vadd.f32 %v990_v12, %v919_v23 }
 0x259   :  { %v994_v26 = vmax.f32 %v991_v25, 0.0 }
 0x25b   :  { %v1056_v27 = vmul.f32 -1.442695, %v994_v26 }
 0x25d   :  { %1150 = vpow2.f32 %v1056_v27 }
 0x26a   :  { %v1151_v28 = vpop.eup %1150 }
 0x26b   :  { %v998_v29 = vadd.f32 1.0, %v1151_v28 }
 0x26d   :  { %1152 = vrcp.f32 %v998_v29 }
 0x27a   :  { %v1153_v31 = vpop.eup %1152 }
 0x27b   :  { %v1004_v32 = vrot.slane %v1153_v31, %v1003_v30  ;;  %v1011_v34 = vrot.slane %v1153_v31, %v1010_v33 }
 0x27d   :  { %1006 = vbcast.lane.b32.xlu1 %v1004_v32, 256 }
 0x281   :  { %1013 = vbcast.lane.b32.xlu1 %v1011_v34, 256 }
 0x2ef   :  { %v1007_v39 = vpop.permute.xlu1 %1006 }
 0x2f0   :  { %v1023_v40 = vrot.slane %v1007_v39, %v1022_v38 }
 0x2f2   :  { %v1033_v41 = vmul.f32 %v1023_v40, %v1241_v0 }
 0x2f3   :  { %v1014_v42 = vpop.permute.xlu1 %1013 }
 0x2f4   :  { %1035 = vst [vmem:[#allocation5] sm:$0xff] %v1033_v41  ;;  %v1030_v43 = vrot.slane %v1014_v42, %v1022_v38 }
 0x2f6   :  { %v1034_v44 = vmul.f32 %v1030_v43, %v1243_v1 }
 0x2f8   :  { %1036 = vst [vmem:[#allocation5 + $0x8] sm:$0xff] %v1034_v44 }
 0x2f9   :  { %1185 = shalt.err (!%p1182_p9)
}
 0x2fa   :  { %1048 = dma.vmem_to_hbm [thread:$0]  %s1043_s29, 256, %s1318_s5, [#allocation4], %s1199_s21, %s1199_s21, %s1200_s22  }
 0x2fb   :  { %1196 = dma.done.wait [#allocation4], 256  }
 0x2fc   :  { %1197 = vsyncadd [#allocation4], 4294967040 }
 0x2fd   :  { %1052 = vsyncpa [#allocation3], 1 }
 0x2fe   :  { %1053 = vsyncpa [#allocation4], 1 }

</bundles_post_ra>
